<compile_context>
chip_gen: v7x
topology: tpu7x:2x2x1
jax: 0.10.0
libtpu: 0.0.40
codegen_flags: <defaults>
</compile_context>

<pallas_src>
import functools

import jax
import jax.numpy as jnp
from jax.experimental import pallas as pl
from jax.experimental.pallas import tpu as pltpu


def _round_up(x, m):
    return (x + m - 1) // m * m


# ----------------------------------------------------------------------------
# Pallas kernel: fused 3-layer MLP (Linear+ReLU, Linear+ReLU, row-dot+sigmoid)
# ----------------------------------------------------------------------------

def _adv_net_kernel(x_ref, w1_ref, b1_ref, w2_ref, b2_ref, w3_ref, b3_ref,
                    y_ref, h_ref):
    # GRL (x * 1.0 + register_hook) is a forward identity; reversal is backward-only.
    x = x_ref[...].astype(jnp.bfloat16)

    # ad_layer1 + relu1   (dropout1 is identity at inference)
    h1 = jnp.dot(x, w1_ref[...], preferred_element_type=jnp.float32)
    h1 = jnp.maximum(h1 + b1_ref[...], 0.0)

    # ad_layer2 + relu2   (dropout2 is identity at inference)  -> xf1
    h2 = jnp.dot(h1.astype(jnp.bfloat16), w2_ref[...],
                 preferred_element_type=jnp.float32)
    h2 = jnp.maximum(h2 + b2_ref[...], 0.0)
    h_ref[...] = h2.astype(h_ref.dtype)

    # ad_layer3 + sigmoid: a single output unit does not need the MXU.
    # VPU broadcast-multiply by the (1, Hp) weight row + XLU lane reduction;
    # padded hidden columns of h2 and w3 are zero, so they contribute nothing.
    logit = jnp.sum(h2 * w3_ref[...], axis=-1, keepdims=True) + b3_ref[...]
    # Broadcast across the lane-dense 128-wide y block; wrapper keeps column 0.
    y_ref[...] = jnp.broadcast_to(jax.nn.sigmoid(logit),
                                  y_ref.shape).astype(y_ref.dtype)


# ----------------------------------------------------------------------------
# Wrapper
# ----------------------------------------------------------------------------

def adversarial_network2_forward(params, x, *, hidden_size, tm=256):
    """Returns (y, xf1), matching AdversarialNetwork2.forward in eval mode."""
    M, K = x.shape
    Kp, Hp = params["w1"].shape          # padded (in_feature, hidden)

    # Only pad what is actually misaligned (K is usually already lane-aligned).
    if K != Kp:
        x = jnp.pad(x, ((0, 0), (0, Kp - K)))   # padded K rows of W1 are zero

    # Batch tile: 8 sublanes for tiny batches; up to `tm` rows for large M so
    # the MXU is filled instead of paying per-grid-step overhead.
    tm_eff = min(tm, max(8, _round_up(M, 8)))
    Mp = _round_up(M, tm_eff)
    if Mp != M:
        x = jnp.pad(x, ((0, Mp - M), (0, 0)))

    param_bytes = sum(int(params[k].size) * params[k].dtype.itemsize
                      for k in ("w1", "b1", "w2", "b2", "w3", "b3"))
    flops = 2 * Mp * (Kp * Hp + Hp * Hp + Hp)
    bytes_accessed = (Mp * Kp * x.dtype.itemsize + param_bytes
                      + Mp * (Hp + 128) * 4)

    # Explicit scoped-VMEM budget (review item): weights + double-buffered
    # x/output tiles + live activations, clamped to [32 MiB, 64 MiB] so it is
    # valid on v5e/v6e (128 MiB physical) and v7x (64 MiB physical) alike.
    block_bytes = (tm_eff * Kp * x.dtype.itemsize       # x tile
                   + tm_eff * (Hp + 128) * 4            # y / xf1 tiles
                   + 3 * tm_eff * Hp * 4)               # live h1/h2/temps
    vmem_limit = min(64 << 20, max(32 << 20, 2 * (param_bytes + block_bytes)))

    y_pad, h_pad = pl.pallas_call(
        _adv_net_kernel,
        out_shape=(jax.ShapeDtypeStruct((Mp, 128), jnp.float32),
                   jax.ShapeDtypeStruct((Mp, Hp), jnp.float32)),
        grid_spec=pltpu.PrefetchScalarGridSpec(
            num_scalar_prefetch=0,
            grid=(Mp // tm_eff,),
            in_specs=[
                pl.BlockSpec((tm_eff, Kp), lambda i: (i, 0)),  # x rows
                pl.BlockSpec((Kp, Hp), lambda i: (0, 0)),      # W1 (VMEM-resident)
                pl.BlockSpec((1, Hp), lambda i: (0, 0)),       # b1
                pl.BlockSpec((Hp, Hp), lambda i: (0, 0)),      # W2 (VMEM-resident)
                pl.BlockSpec((1, Hp), lambda i: (0, 0)),       # b2
                pl.BlockSpec((1, Hp), lambda i: (0, 0)),       # w3 row (no 128-wide pad)
                pl.BlockSpec((1, 1), lambda i: (0, 0)),        # b3
            ],
            out_specs=[
                pl.BlockSpec((tm_eff, 128), lambda i: (i, 0)), # y (lane-dense)
                pl.BlockSpec((tm_eff, Hp), lambda i: (i, 0)),  # xf1
            ],
        ),
        compiler_params=pltpu.CompilerParams(
            dimension_semantics=("parallel",),
            vmem_limit_bytes=int(vmem_limit)),
        cost_estimate=pl.CostEstimate(
            flops=int(flops), transcendentals=int(Mp),
            bytes_accessed=int(bytes_accessed)),
    )(x, params["w1"], params["b1"], params["w2"], params["b2"],
      params["w3"], params["b3"])

    # Padded batch rows carry garbage (sigmoid(b3)=0.5 etc.); always slice [:M].
    y = y_pad[:M, :1]
    xf1 = h_pad[:M, :hidden_size]
    return y, xf1


# ----------------------------------------------------------------------------
# Parameters (xavier-normal weights, zero bias, matching init_weights),
# stored pre-transposed (K, N), zero-padded to lane multiples, bf16 for the
# MXU operands; the layer-3 head is a single (1, Hp) row for the VPU/XLU path.
# ----------------------------------------------------------------------------

def init_adv_net_params(key, in_feature, hidden_size, *, wdtype=jnp.bfloat16):
    Kp = _round_up(in_feature, 128)
    Hp = _round_up(hidden_size, 128)
    k1, k2, k3 = jax.random.split(key, 3)

    def xavier_normal(k, fan_in, fan_out, shape):
        std = jnp.sqrt(2.0 / (fan_in + fan_out)).astype(jnp.float32)
        return jax.random.normal(k, shape, jnp.float32) * std

    # PyTorch nn.Linear stores (out, in); we store (in, out) so the kernel
    # never transposes. Padded rows/cols are zero.
    w1 = xavier_normal(k1, in_feature, hidden_size, (in_feature, hidden_size))
    w2 = xavier_normal(k2, hidden_size, hidden_size, (hidden_size, hidden_size))
    w3 = xavier_normal(k3, hidden_size, 1, (1, hidden_size))   # head as a row

    return {
        "w1": jnp.pad(w1, ((0, Kp - in_feature), (0, Hp - hidden_size))).astype(wdtype),
        "b1": jnp.zeros((1, Hp), jnp.float32),
        "w2": jnp.pad(w2, ((0, Hp - hidden_size), (0, Hp - hidden_size))).astype(wdtype),
        "b2": jnp.zeros((1, Hp), jnp.float32),
        # 2 KiB f32 row (was a 256 KiB lane-padded (Hp,128) MXU operand).
        "w3": jnp.pad(w3, ((0, 0), (0, Hp - hidden_size))).astype(jnp.float32),
        "b3": jnp.zeros((1, 1), jnp.float32),
    }


# ----------------------------------------------------------------------------
# Main
# ----------------------------------------------------------------------------

if __name__ == "__main__":
    IN_FEATURE, HIDDEN, BATCH = 256, 512, 2

    key = jax.random.PRNGKey(0)
    pkey, xkey = jax.random.split(key)

    params = init_adv_net_params(pkey, IN_FEATURE, HIDDEN)
    x = jax.random.normal(xkey, (BATCH, IN_FEATURE), jnp.float32)

    # TODO(synk): gradient-reversal hook, dropout RNG masking and iter_num/coeff
    # bookkeeping are training-only (no forward effect); omitted here.
    fwd = jax.jit(functools.partial(adversarial_network2_forward,
                                    hidden_size=HIDDEN))
    y, xf1 = fwd(params, x)
    jax.block_until_ready((y, xf1))

    assert y.shape == (BATCH, 1), y.shape
    assert xf1.shape == (BATCH, HIDDEN), xf1.shape
    assert bool(jnp.isfinite(y).all()) and bool(jnp.isfinite(xf1).all())
    assert bool((y > 0.0).all()) and bool((y < 1.0).all())

    # Plain-JAX reference (same bf16 weights, f32 math) — loose sanity check;
    # the kernel additionally rounds activations to bf16 before each MXU dot,
    # a deliberate, documented numerics difference vs. the f32 PyTorch forward.
    def ref_forward(p, xx):
        w1 = p["w1"].astype(jnp.float32)[:IN_FEATURE, :HIDDEN]
        w2 = p["w2"].astype(jnp.float32)[:HIDDEN, :HIDDEN]
        w3 = p["w3"][0, :HIDDEN]
        h1 = jnp.maximum(xx @ w1 + p["b1"][:, :HIDDEN], 0.0)
        h2 = jnp.maximum(h1 @ w2 + p["b2"][:, :HIDDEN], 0.0)
        yy = jax.nn.sigmoid(h2 @ w3[:, None] + p["b3"])
        return yy, h2

    y_ref, h_ref = ref_forward(params, x)
    assert jnp.allclose(xf1, h_ref, rtol=5e-2, atol=5e-2)
    assert jnp.allclose(y, y_ref, rtol=5e-2, atol=5e-2)

    print("KERNEL_OK")
</pallas_src>

<mosaic_0001>
module attributes {stable_mosaic.version = 11 : i64} {
  func.func @_adv_net_kernel(%arg0: i32, %arg1: memref<8x256xf32, #tpu.memory_space<vmem>>, %arg2: memref<256x512xbf16, #tpu.memory_space<vmem>>, %arg3: memref<1x512xf32, #tpu.memory_space<vmem>>, %arg4: memref<512x512xbf16, #tpu.memory_space<vmem>>, %arg5: memref<1x512xf32, #tpu.memory_space<vmem>>, %arg6: memref<1x512xf32, #tpu.memory_space<vmem>>, %arg7: memref<1x1xf32, #tpu.memory_space<vmem>>, %arg8: memref<8x128xf32, #tpu.memory_space<vmem>>, %arg9: memref<8x512xf32, #tpu.memory_space<vmem>>) attributes {dimension_semantics = [#tpu.dimension_semantics<parallel>], iteration_bounds = array<i64: 1>, scalar_prefetch = 0 : i64, scratch_operands = 0 : i64, tpu.core_type = #tpu.core_type<tc>, window_params = [{transform_indices = @transform_0, window_bounds = array<i64: 8, 256>}, {pipeline_mode = #tpu.pipeline_mode<synchronous>, transform_indices = @transform_1, window_bounds = array<i64: 256, 512>}, {pipeline_mode = #tpu.pipeline_mode<synchronous>, transform_indices = @transform_2, window_bounds = array<i64: 1, 512>}, {pipeline_mode = #tpu.pipeline_mode<synchronous>, transform_indices = @transform_3, window_bounds = array<i64: 512, 512>}, {pipeline_mode = #tpu.pipeline_mode<synchronous>, transform_indices = @transform_4, window_bounds = array<i64: 1, 512>}, {pipeline_mode = #tpu.pipeline_mode<synchronous>, transform_indices = @transform_5, window_bounds = array<i64: 1, 512>}, {pipeline_mode = #tpu.pipeline_mode<synchronous>, transform_indices = @transform_6, window_bounds = array<i64: 1, 1>}, {transform_indices = @transform_7, window_bounds = array<i64: 8, 128>}, {transform_indices = @transform_8, window_bounds = array<i64: 8, 512>}]} {
    %c0 = arith.constant 0 : index
    %c0_0 = arith.constant 0 : index
    %0 = vector.load %arg1[%c0, %c0_0] : memref<8x256xf32, #tpu.memory_space<vmem>>, vector<8x256xf32>
    %1 = arith.truncf %0 : vector<8x256xf32> to vector<8x256xbf16>
    %c0_1 = arith.constant 0 : index
    %c0_2 = arith.constant 0 : index
    %2 = vector.load %arg2[%c0_1, %c0_2] : memref<256x512xbf16, #tpu.memory_space<vmem>>, vector<256x512xbf16>
    %cst = arith.constant dense<0.000000e+00> : vector<8x512xf32>
    %3 = tpu.matmul %1, %2, %cst {dimension_numbers = #tpu.dot_dimension_numbers<[1], [0], [0], [1], [0, 0, 1, 1], [], []>} : vector<8x256xbf16>, vector<256x512xbf16>, vector<8x512xf32> -> vector<8x512xf32>
    %c0_3 = arith.constant 0 : index
    %c0_4 = arith.constant 0 : index
    %4 = vector.load %arg3[%c0_3, %c0_4] : memref<1x512xf32, #tpu.memory_space<vmem>>, vector<1x512xf32>
    %5 = vector.broadcast %4 : vector<1x512xf32> to vector<8x512xf32>
    %6 = arith.addf %3, %5 : vector<8x512xf32>
    %cst_5 = arith.constant 0.000000e+00 : f32
    %7 = vector.broadcast %cst_5 : f32 to vector<8x512xf32>
    %8 = arith.maximumf %6, %7 : vector<8x512xf32>
    %9 = arith.truncf %8 : vector<8x512xf32> to vector<8x512xbf16>
    %c0_6 = arith.constant 0 : index
    %c0_7 = arith.constant 0 : index
    %10 = vector.load %arg4[%c0_6, %c0_7] : memref<512x512xbf16, #tpu.memory_space<vmem>>, vector<512x512xbf16>
    %cst_8 = arith.constant dense<0.000000e+00> : vector<8x512xf32>
    %11 = tpu.matmul %9, %10, %cst_8 {dimension_numbers = #tpu.dot_dimension_numbers<[1], [0], [0], [1], [0, 0, 1, 1], [], []>} : vector<8x512xbf16>, vector<512x512xbf16>, vector<8x512xf32> -> vector<8x512xf32>
    %c0_9 = arith.constant 0 : index
    %c0_10 = arith.constant 0 : index
    %12 = vector.load %arg5[%c0_9, %c0_10] : memref<1x512xf32, #tpu.memory_space<vmem>>, vector<1x512xf32>
    %13 = vector.broadcast %12 : vector<1x512xf32> to vector<8x512xf32>
    %14 = arith.addf %11, %13 : vector<8x512xf32>
    %cst_11 = arith.constant 0.000000e+00 : f32
    %15 = vector.broadcast %cst_11 : f32 to vector<8x512xf32>
    %16 = arith.maximumf %14, %15 : vector<8x512xf32>
    %c0_12 = arith.constant 0 : index
    %c0_13 = arith.constant 0 : index
    %17 = vector.load %arg9[%c0_12, %c0_13] : memref<8x512xf32, #tpu.memory_space<vmem>>, vector<8x512xf32>
    tpu.vector_store %arg9[%c0_12, %c0_13], %16 {strides = array<i32>} : memref<8x512xf32, #tpu.memory_space<vmem>>, vector<8x512xf32>,
    %c0_14 = arith.constant 0 : index
    %c0_15 = arith.constant 0 : index
    %18 = vector.load %arg6[%c0_14, %c0_15] : memref<1x512xf32, #tpu.memory_space<vmem>>, vector<1x512xf32>
    %19 = vector.broadcast %18 : vector<1x512xf32> to vector<8x512xf32>
    %20 = arith.mulf %16, %19 : vector<8x512xf32>
    %cst_16 = arith.constant dense<0.000000e+00> : vector<8xf32>
    %21 = vector.multi_reduction <add>, %20, %cst_16 [1] : vector<8x512xf32> to vector<8xf32>
    %22 = vector.shape_cast %21 : vector<8xf32> to vector<8x1xf32>
    %c0_17 = arith.constant 0 : index
    %c0_18 = arith.constant 0 : index
    %23 = vector.load %arg7[%c0_17, %c0_18] : memref<1x1xf32, #tpu.memory_space<vmem>>, vector<1x1xf32>
    %24 = vector.broadcast %23 : vector<1x1xf32> to vector<8x1xf32>
    %25 = arith.addf %22, %24 : vector<8x1xf32>
    %26 = arith.negf %25 : vector<8x1xf32>
    %27 = math.exp %26 : vector<8x1xf32>
    %cst_19 = arith.constant 1.000000e+00 : f32
    %28 = vector.broadcast %cst_19 : f32 to vector<8x1xf32>
    %29 = arith.addf %28, %27 : vector<8x1xf32>
    %30 = arith.divf %28, %29 : vector<8x1xf32>
    %31 = vector.shape_cast %30 : vector<8x1xf32> to vector<8x1xf32>
    %32 = vector.broadcast %31 : vector<8x1xf32> to vector<8x128xf32>
    %c0_20 = arith.constant 0 : index
    %c0_21 = arith.constant 0 : index
    %33 = vector.load %arg8[%c0_20, %c0_21] : memref<8x128xf32, #tpu.memory_space<vmem>>, vector<8x128xf32>
    tpu.vector_store %arg8[%c0_20, %c0_21], %32 {strides = array<i32>} : memref<8x128xf32, #tpu.memory_space<vmem>>, vector<8x128xf32>,
    return
  }
  func.func @transform_0(%arg0: i32) -> (i32, i32) {
    %c0_i32 = arith.constant 0 : i32
    %c0_i32_0 = arith.constant 0 : i32
    return %arg0, %c0_i32 : i32, i32
  }
  func.func @transform_1(%arg0: i32) -> (i32, i32) {
    %c0_i32 = arith.constant 0 : i32
    %c0_i32_0 = arith.constant 0 : i32
    %c0_i32_1 = arith.constant 0 : i32
    return %c0_i32, %c0_i32_0 : i32, i32
  }
  func.func @transform_2(%arg0: i32) -> (i32, i32) {
    %c0_i32 = arith.constant 0 : i32
    %c0_i32_0 = arith.constant 0 : i32
    %c0_i32_1 = arith.constant 0 : i32
    return %c0_i32, %c0_i32_0 : i32, i32
  }
  func.func @transform_3(%arg0: i32) -> (i32, i32) {
    %c0_i32 = arith.constant 0 : i32
    %c0_i32_0 = arith.constant 0 : i32
    %c0_i32_1 = arith.constant 0 : i32
    return %c0_i32, %c0_i32_0 : i32, i32
  }
  func.func @transform_4(%arg0: i32) -> (i32, i32) {
    %c0_i32 = arith.constant 0 : i32
    %c0_i32_0 = arith.constant 0 : i32
    %c0_i32_1 = arith.constant 0 : i32
    return %c0_i32, %c0_i32_0 : i32, i32
  }
  func.func @transform_5(%arg0: i32) -> (i32, i32) {
    %c0_i32 = arith.constant 0 : i32
    %c0_i32_0 = arith.constant 0 : i32
    %c0_i32_1 = arith.constant 0 : i32
    return %c0_i32, %c0_i32_0 : i32, i32
  }
  func.func @transform_6(%arg0: i32) -> (i32, i32) {
    %c0_i32 = arith.constant 0 : i32
    %c0_i32_0 = arith.constant 0 : i32
    %c0_i32_1 = arith.constant 0 : i32
    return %c0_i32, %c0_i32_0 : i32, i32
  }
  func.func @transform_7(%arg0: i32) -> (i32, i32) {
    %c0_i32 = arith.constant 0 : i32
    %c0_i32_0 = arith.constant 0 : i32
    return %arg0, %c0_i32 : i32, i32
  }
  func.func @transform_8(%arg0: i32) -> (i32, i32) {
    %c0_i32 = arith.constant 0 : i32
    %c0_i32_0 = arith.constant 0 : i32
    return %arg0, %c0_i32 : i32, i32
  }
}

</mosaic_0001>

<bundles_post_ra>
// kernel: adversarial_network2_forward.1
= control target key start
LH: loop header
LB: loop body
LE: loop exit
PB: predicated region body
PF: predicated region fallthrough
CT: control target
= control target key end

     0   :  { %s2275_s0 = inlined_call_operand.vmem [shape: f32[8,256], index: 0, kind: input, shape index: {}]   ;;  %s2276_s1 = inlined_call_operand.hbm [shape: bf16[256,512], index: 1, kind: input, shape index: {}]   ;;  %s2277_s2 = inlined_call_operand.vmem [shape: f32[1,512], index: 2, kind: input, shape index: {}]   ;;  %s2278_s3 = inlined_call_operand.hbm [shape: bf16[512,512], index: 3, kind: input, shape index: {}]   ;;  %s2279_s4 = inlined_call_operand.vmem [shape: f32[1,512], index: 4, kind: input, shape index: {}]   ;;  %s2280_s5 = inlined_call_operand.vmem [shape: f32[1,512], index: 5, kind: input, shape index: {}]   ;;  %s2281_s6 = inlined_call_operand.<no memory space> [shape: f32[1,1], index: 6, kind: input, shape index: {}]   ;;  %s2282_s7 = inlined_call_operand.vmem [shape: f32[8,128], index: 7, kind: output, shape index: {0}]   ;;  %s2283_s8 = inlined_call_operand.vmem [shape: f32[8,512], index: 8, kind: output, shape index: {1}]  }
   0x1   :  { %v14_v0 = vstv %s2281_s6 }
   0x2   :  { %15 = vst [vmem:[#allocation2] sm:$0x1] %v14_v0 }
   0x3   :  { %16 = vsyncpa [#allocation4], 0 }
   0x4   :  { %17 = vsyncpa [#allocation6], 0  ;;  %s2133_s29 = smov [#allocation3]   ;;  %s2085_s11 = scalar_lea.hbm %s2276_s1, 8192 }
   0x5   :  { %s25_s30 = sshll.u32 %s2133_s29, 4  ;;  %p2086_p0 = scmp.ne.s32.totalorder %s2276_s1, %s2085_s11  ;;  %s26_s30 = int_to_ptr.vmem [resolvable:$true] %s25_s30 }
   0x6   :  { %p2089_p1 = scmp.lt.u32.totalorder %s2085_s11, %s2276_s1 }
   0x8   :  { %p2091_p2 = pnand %p2089_p1, %p2086_p0 }
   0xa   :  { %2094 = shalt.err (!%p2091_p2)
}
   0xb   :  { %s2095_s6 = scalar_lea.vmem %s26_s30, 8192  ;;  %p2100_p4 = scmp.lt.s32.totalorder %s26_s30, %s26_s30 }
   0xc   :  { %p2096_p3 = scmp.ne.s32.totalorder %s26_s30, %s2095_s6  ;;  %p2101_p5 = scmp.lt.s32.totalorder %s2095_s6, %s2095_s6 }
   0xe   :  { %p2102_p6 = por %p2101_p5, %p2100_p4 }
  0x10   :  { %p2103_p7 = pnand %p2102_p6, %p2096_p3 }
  0x12   :  { %2106 = shalt.err (!%p2103_p7)
}
  0x13   :  { %s2134_s16 = smov 256   ;;  %s2135_s17 = smov 16  }
  0x14   :  { %31 = dma.hbm_to_vmem [thread:$0]  %s2276_s1, 8192, %s26_s30, [#allocation4], %s2134_s16, %s2134_s16, %s2135_s17  }
  0x15   :  { %s2136_s20 = smov [#allocation5]   ;;  %s2107_s24 = scalar_lea.hbm %s2278_s3, 16384 }
  0x16   :  { %s39_s21 = sshll.u32 %s2136_s20, 4  ;;  %p2108_p8 = scmp.ne.s32.totalorder %s2278_s3, %s2107_s24  ;;  %s40_s21 = int_to_ptr.vmem [resolvable:$true] %s39_s21 }
  0x17   :  { %p2111_p9 = scmp.lt.u32.totalorder %s2107_s24, %s2278_s3 }
  0x19   :  { %p2113_p10 = pnand %p2111_p9, %p2108_p8 }
  0x1b   :  { %2116 = shalt.err (!%p2113_p10)
}
  0x1c   :  { %s2117_s29 = scalar_lea.vmem %s40_s21, 16384  ;;  %p2122_p12 = scmp.lt.s32.totalorder %s40_s21, %s40_s21 }
  0x1d   :  { %p2118_p11 = scmp.ne.s32.totalorder %s40_s21, %s2117_s29  ;;  %p2123_p13 = scmp.lt.s32.totalorder %s2117_s29, %s2117_s29 }
  0x1f   :  { %p2124_p0 = por %p2123_p13, %p2122_p12 }
  0x21   :  { %p2125_p1 = pnand %p2124_p0, %p2118_p11 }
  0x23   :  { %2128 = shalt.err (!%p2125_p1)
}
  0x24   :  { %45 = dma.hbm_to_vmem [thread:$0]  %s2278_s3, 16384, %s40_s21, [#allocation6], %s2134_s16, %s2134_s16, %s2135_s17  }
  0x25   :  { %2129 = dma.done.wait [#allocation4], 8192  }
  0x26   :  { %2130 = vsyncadd [#allocation4], 4294959104 }
  0x27   :  { %2131 = dma.done.wait [#allocation6], 16384  }
  0x28   :  { %2132 = vsyncadd [#allocation6], 4294950912  ;;  %v1793_v1 = vld [vmem:[#allocation3 + $0x4] ss:$16 sps:$4 sm:$0xff]   ;;  %v1795_v2 = vld [vmem:[#allocation3] ss:$16 sps:$4 sm:$0xff]  }
  0x29   :  { %468 = vmatprep.subr.bf16.mxu0 %v1793_v1  ;;  %v1796_v3 = vld [vmem:[#allocation3 + $0x24] ss:$16 sps:$4 sm:$0xff]   ;;  %v1798_v4 = vld [vmem:[#allocation3 + $0x20] ss:$16 sps:$4 sm:$0xff]   ;;  %v1840_v14 = vld [vmem:[#allocation3 + $0xc] ss:$16 sps:$4 sm:$0xff]  }
  0x2a   :  { %469 = vmatpush1.bf16.msra.mxu0 %v1795_v2  ;;  %v1799_v5 = vld [vmem:[#allocation3 + $0x44] ss:$16 sps:$4 sm:$0xff]   ;;  %v1801_v6 = vld [vmem:[#allocation3 + $0x40] ss:$16 sps:$4 sm:$0xff]   ;;  %v1843_v16 = vld [vmem:[#allocation3 + $0x8] ss:$16 sps:$4 sm:$0xff]   ;;  %509 = vmatprep.subr.bf16.mxu1 %v1840_v14 }
  0x2b   :  { %470 = vmatprep.subr.bf16.mxu0 %v1796_v3  ;;  %v1802_v7 = vld [vmem:[#allocation3 + $0x64] ss:$16 sps:$4 sm:$0xff]   ;;  %v1804_v8 = vld [vmem:[#allocation3 + $0x60] ss:$16 sps:$4 sm:$0xff]   ;;  %510 = vmatpush1.bf16.msra.mxu1 %v1843_v16  ;;  %v1844_v20 = vld [vmem:[#allocation3 + $0x2c] ss:$16 sps:$4 sm:$0xff]  }
  0x2c   :  { %v1805_v9 = vld [vmem:[#allocation3 + $0x84] ss:$16 sps:$4 sm:$0xff]   ;;  %v1807_v10 = vld [vmem:[#allocation3 + $0x80] ss:$16 sps:$4 sm:$0xff]   ;;  %v1846_v21 = vld [vmem:[#allocation3 + $0x28] ss:$16 sps:$4 sm:$0xff]   ;;  %511 = vmatprep.subr.bf16.mxu1 %v1844_v20 }
  0x2d   :  { %v1808_v11 = vld [vmem:[#allocation3 + $0xa4] ss:$16 sps:$4 sm:$0xff]   ;;  %v1810_v12 = vld [vmem:[#allocation3 + $0xa0] ss:$16 sps:$4 sm:$0xff]   ;;  %v1847_v22 = vld [vmem:[#allocation3 + $0x4c] ss:$16 sps:$4 sm:$0xff]  }
  0x2e   :  { %471 = vmatpush1.bf16.msra.mxu0 %v1798_v4  ;;  %v1811_v13 = vld [vmem:[#allocation3 + $0xc4] ss:$16 sps:$4 sm:$0xff]   ;;  %v1813_v15 = vld [vmem:[#allocation3 + $0xc0] ss:$16 sps:$4 sm:$0xff]   ;;  %v1849_v25 = vld [vmem:[#allocation3 + $0x48] ss:$16 sps:$4 sm:$0xff]  }
  0x2f   :  { %472 = vmatprep.subr.bf16.mxu0 %v1799_v5  ;;  %v59_v17 = vld [vmem:[%s2275_s0 + $0x8] sm:$0xff]  ;;  %v1816_v23 = vld [vmem:[#allocation3 + $0xe0] ss:$16 sps:$4 sm:$0xff]   ;;  %512 = vmatpush1.bf16.msra.mxu1 %v1846_v21 }
  0x30   :  { %v1814_v18 = vld [vmem:[#allocation3 + $0xe4] ss:$16 sps:$4 sm:$0xff]   ;;  %v61_v19 = vpack.c.bf16 %v59_v17, %v59_v17  ;;  %513 = vmatprep.subr.bf16.mxu1 %v1847_v22  ;;  %v1850_v26 = vld [vmem:[#allocation3 + $0x6c] ss:$16 sps:$4 sm:$0xff]   ;;  %v1819_v27 = vld [vmem:[#allocation3 + $0x100] ss:$16 sps:$4 sm:$0xff]  }
  0x31   :  { %v1817_v24 = vld [vmem:[#allocation3 + $0x104] ss:$16 sps:$4 sm:$0xff]   ;;  %v1852_v29 = vld [vmem:[#allocation3 + $0x68] ss:$16 sps:$4 sm:$0xff]   ;;  %v1853_v30 = vld [vmem:[#allocation3 + $0x8c] ss:$16 sps:$4 sm:$0xff]  }
  0x32   :  { %473 = vmatpush1.bf16.msra.mxu0 %v1801_v6  ;;  %500 = vmatprep.mubr.bf16.mxu0 %v61_v19  ;;  %v1820_v28 = vld [vmem:[#allocation3 + $0x124] ss:$16 sps:$4 sm:$0xff]   ;;  %v1822_v31 = vld [vmem:[#allocation3 + $0x120] ss:$16 sps:$4 sm:$0xff]   ;;  %v1855_v33 = vld [vmem:[#allocation3 + $0x88] ss:$16 sps:$4 sm:$0xff]  }
  0x33   :  { %474 = vmatprep.subr.bf16.mxu0 %v1802_v7  ;;  %541 = vmatprep.mubr.bf16.mxu1 %v61_v19  ;;  %v1823_v32 = vld [vmem:[#allocation3 + $0x144] ss:$16 sps:$4 sm:$0xff]   ;;  %v1856_v34 = vld [vmem:[#allocation3 + $0xac] ss:$16 sps:$4 sm:$0xff]   ;;  %v1825_v35 = vld [vmem:[#allocation3 + $0x140] ss:$16 sps:$4 sm:$0xff]  }
  0x34   :  { %514 = vmatpush1.bf16.msra.mxu1 %v1849_v25  ;;  %v1826_v36 = vld [vmem:[#allocation3 + $0x164] ss:$16 sps:$4 sm:$0xff]   ;;  %v1858_v37 = vld [vmem:[#allocation3 + $0xa8] ss:$16 sps:$4 sm:$0xff]   ;;  %v1859_v38 = vld [vmem:[#allocation3 + $0xcc] ss:$16 sps:$4 sm:$0xff]  }
  0x35   :  { %515 = vmatprep.subr.bf16.mxu1 %v1850_v26  ;;  %v1828_v39 = vld [vmem:[#allocation3 + $0x160] ss:$16 sps:$4 sm:$0xff]   ;;  %v1829_v40 = vld [vmem:[#allocation3 + $0x184] ss:$16 sps:$4 sm:$0xff]   ;;  %v1861_v41 = vld [vmem:[#allocation3 + $0xc8] ss:$16 sps:$4 sm:$0xff]  }
  0x36   :  { %475 = vmatpush1.bf16.msra.mxu0 %v1804_v8  ;;  %v1862_v42 = vld [vmem:[#allocation3 + $0xec] ss:$16 sps:$4 sm:$0xff]   ;;  %v1831_v43 = vld [vmem:[#allocation3 + $0x180] ss:$16 sps:$4 sm:$0xff]   ;;  %v1832_v44 = vld [vmem:[#allocation3 + $0x1a4] ss:$16 sps:$4 sm:$0xff]  }
  0x37   :  { %476 = vmatprep.subr.bf16.mxu0 %v1805_v9  ;;  %v1864_v45 = vld [vmem:[#allocation3 + $0xe8] ss:$16 sps:$4 sm:$0xff]   ;;  %v1865_v46 = vld [vmem:[#allocation3 + $0x10c] ss:$16 sps:$4 sm:$0xff]   ;;  %v1834_v47 = vld [vmem:[#allocation3 + $0x1a0] ss:$16 sps:$4 sm:$0xff]  }
  0x38   :  { %516 = vmatpush1.bf16.msra.mxu1 %v1852_v29  ;;  %v1835_v48 = vld [vmem:[#allocation3 + $0x1c4] ss:$16 sps:$4 sm:$0xff]   ;;  %v1867_v49 = vld [vmem:[#allocation3 + $0x108] ss:$16 sps:$4 sm:$0xff]   ;;  %v1868_v50 = vld [vmem:[#allocation3 + $0x12c] ss:$16 sps:$4 sm:$0xff]  }
  0x39   :  { %517 = vmatprep.subr.bf16.mxu1 %v1853_v30  ;;  %v1837_v51 = vld [vmem:[#allocation3 + $0x1c0] ss:$16 sps:$4 sm:$0xff]   ;;  %v1838_v52 = vld [vmem:[#allocation3 + $0x1e4] ss:$16 sps:$4 sm:$0xff]   ;;  %v1870_v53 = vld [vmem:[#allocation3 + $0x128] ss:$16 sps:$4 sm:$0xff]  }
  0x3a   :  { %477 = vmatpush1.bf16.msra.mxu0 %v1807_v10  ;;  %v1871_v54 = vld [vmem:[#allocation3 + $0x14c] ss:$16 sps:$4 sm:$0xff]   ;;  %v1842_v55 = vld [vmem:[#allocation3 + $0x1e0] ss:$16 sps:$4 sm:$0xff]   ;;  %v1873_v57 = vld [vmem:[#allocation3 + $0x148] ss:$16 sps:$4 sm:$0xff]  }
  0x3b   :  { %478 = vmatprep.subr.bf16.mxu0 %v1808_v11  ;;  %v58_v56 = vld [vmem:[%s2275_s0] sm:$0xff]  ;;  %v1876_v62 = vld [vmem:[#allocation3 + $0x168] ss:$16 sps:$4 sm:$0xff]  }
  0x3c   :  { %518 = vmatpush1.bf16.msra.mxu1 %v1855_v33  ;;  %v1891_v58 = vld [vmem:[#allocation5 + $0x4] ss:$16 sps:$4 sm:$0xff]   ;;  %v1874_v59 = vld [vmem:[#allocation3 + $0x16c] ss:$16 sps:$4 sm:$0xff]   ;;  %v60_v60 = vpack.c.bf16 %v58_v56, %v58_v56  ;;  %v1889_v61 = vld [vmem:[#allocation5] ss:$16 sps:$4 sm:$0xff]  }
  0x3d   :  { %519 = vmatprep.subr.bf16.mxu1 %v1856_v34  ;;  %v1897_v63 = vld [vmem:[#allocation5 + $0x24] ss:$16 sps:$4 sm:$0xff]   ;;  %v1877_v0 = vld [vmem:[#allocation3 + $0x18c] ss:$16 sps:$4 sm:$0xff]   ;;  %v1895_v1 = vld [vmem:[#allocation5 + $0x20] ss:$16 sps:$4 sm:$0xff]  }
  0x3e   :  { %479 = vmatpush1.bf16.msra.mxu0 %v1810_v12  ;;  %v1879_v2 = vld [vmem:[#allocation3 + $0x188] ss:$16 sps:$4 sm:$0xff]   ;;  %v1903_v3 = vld [vmem:[#allocation5 + $0x44] ss:$16 sps:$4 sm:$0xff]   ;;  %v1880_v4 = vld [vmem:[#allocation3 + $0x1ac] ss:$16 sps:$4 sm:$0xff]  }
  0x3f   :  { %480 = vmatprep.subr.bf16.mxu0 %v1811_v13  ;;  %v1901_v5 = vld [vmem:[#allocation5 + $0x40] ss:$16 sps:$4 sm:$0xff]   ;;  %v1882_v6 = vld [vmem:[#allocation3 + $0x1a8] ss:$16 sps:$4 sm:$0xff]   ;;  %v1909_v7 = vld [vmem:[#allocation5 + $0x64] ss:$16 sps:$4 sm:$0xff]  }
  0x40   :  { %520 = vmatpush1.bf16.msra.mxu1 %v1858_v37  ;;  %v1883_v8 = vld [vmem:[#allocation3 + $0x1cc] ss:$16 sps:$4 sm:$0xff]   ;;  %v1907_v9 = vld [vmem:[#allocation5 + $0x60] ss:$16 sps:$4 sm:$0xff]   ;;  %v1885_v10 = vld [vmem:[#allocation3 + $0x1c8] ss:$16 sps:$4 sm:$0xff]  }
  0x41   :  { %521 = vmatprep.subr.bf16.mxu1 %v1859_v38  ;;  %v1915_v11 = vld [vmem:[#allocation5 + $0x84] ss:$16 sps:$4 sm:$0xff]   ;;  %v1886_v12 = vld [vmem:[#allocation3 + $0x1ec] ss:$16 sps:$4 sm:$0xff]   ;;  %v1913_v13 = vld [vmem:[#allocation5 + $0x80] ss:$16 sps:$4 sm:$0xff]  }
  0x42   :  { %481 = vmatpush1.bf16.msra.mxu0 %v1813_v15  ;;  %v1888_v14 = vld [vmem:[#allocation3 + $0x1e8] ss:$16 sps:$4 sm:$0xff]   ;;  %v1894_v15 = vld [vmem:[#allocation5 + $0xc] ss:$16 sps:$4 sm:$0xff]   ;;  %v1921_v16 = vld [vmem:[#allocation5 + $0xa4] ss:$16 sps:$4 sm:$0xff]  }
  0x43   :  { %482 = vmatprep.subr.bf16.mxu0 %v1814_v18  ;;  %v1919_v17 = vld [vmem:[#allocation5 + $0xa0] ss:$16 sps:$4 sm:$0xff]   ;;  %v1892_v18 = vld [vmem:[#allocation5 + $0x8] ss:$16 sps:$4 sm:$0xff]   ;;  %v1927_v19 = vld [vmem:[#allocation5 + $0xc4] ss:$16 sps:$4 sm:$0xff]  }
  0x44   :  { %522 = vmatpush1.bf16.msra.mxu1 %v1861_v41  ;;  %v1900_v20 = vld [vmem:[#allocation5 + $0x2c] ss:$16 sps:$4 sm:$0xff]   ;;  %v1925_v21 = vld [vmem:[#allocation5 + $0xc0] ss:$16 sps:$4 sm:$0xff]   ;;  %v1898_v22 = vld [vmem:[#allocation5 + $0x28] ss:$16 sps:$4 sm:$0xff]  }
  0x45   :  { %523 = vmatprep.subr.bf16.mxu1 %v1862_v42  ;;  %v1931_v25 = vld [vmem:[#allocation5 + $0xe0] ss:$16 sps:$4 sm:$0xff]   ;;  %v1904_v26 = vld [vmem:[#allocation5 + $0x48] ss:$16 sps:$4 sm:$0xff]  }
  0x46   :  { %483 = vmatpush1.bf16.msra.mxu0 %v1816_v23  ;;  %v1933_v23 = vld [vmem:[#allocation5 + $0xe4] ss:$16 sps:$4 sm:$0xff]   ;;  %v1937_v29 = vld [vmem:[#allocation5 + $0x100] ss:$16 sps:$4 sm:$0xff]   ;;  %v1910_v30 = vld [vmem:[#allocation5 + $0x68] ss:$16 sps:$4 sm:$0xff]  }
  0x47   :  { %484 = vmatprep.subr.bf16.mxu0 %v1817_v24  ;;  %v1906_v24 = vld [vmem:[#allocation5 + $0x4c] ss:$16 sps:$4 sm:$0xff]   ;;  %v1943_v33 = vld [vmem:[#allocation5 + $0x120] ss:$16 sps:$4 sm:$0xff]   ;;  %v1916_v34 = vld [vmem:[#allocation5 + $0x88] ss:$16 sps:$4 sm:$0xff]  }
  0x48   :  { %524 = vmatpush1.bf16.msra.mxu1 %v1864_v45  ;;  %v1949_v37 = vld [vmem:[#allocation5 + $0x140] ss:$16 sps:$4 sm:$0xff]   ;;  %v1922_v38 = vld [vmem:[#allocation5 + $0xa8] ss:$16 sps:$4 sm:$0xff]  }
  0x49   :  { %525 = vmatprep.subr.bf16.mxu1 %v1865_v46  ;;  %v1955_v41 = vld [vmem:[#allocation5 + $0x160] ss:$16 sps:$4 sm:$0xff]   ;;  %v1928_v42 = vld [vmem:[#allocation5 + $0xc8] ss:$16 sps:$4 sm:$0xff]  }
  0x4a   :  { %485 = vmatpush1.bf16.msra.mxu0 %v1819_v27  ;;  %v1939_v27 = vld [vmem:[#allocation5 + $0x104] ss:$16 sps:$4 sm:$0xff]   ;;  %v1961_v45 = vld [vmem:[#allocation5 + $0x180] ss:$16 sps:$4 sm:$0xff]   ;;  %v1934_v46 = vld [vmem:[#allocation5 + $0xe8] ss:$16 sps:$4 sm:$0xff]  }
  0x4b   :  { %486 = vmatprep.subr.bf16.mxu0 %v1820_v28  ;;  %v1912_v28 = vld [vmem:[#allocation5 + $0x6c] ss:$16 sps:$4 sm:$0xff]   ;;  %v1958_v56 = vld [vmem:[#allocation5 + $0x168] ss:$16 sps:$4 sm:$0xff]  }
  0x4c   :  { %526 = vmatpush1.bf16.msra.mxu1 %v1867_v49  ;;  %v1967_v49 = vld [vmem:[#allocation5 + $0x1a0] ss:$16 sps:$4 sm:$0xff]  }
  0x4d   :  { %527 = vmatprep.subr.bf16.mxu1 %v1868_v50  ;;  %v1940_v50 = vld [vmem:[#allocation5 + $0x108] ss:$16 sps:$4 sm:$0xff]  }
  0x4e   :  { %487 = vmatpush1.bf16.msra.mxu0 %v1822_v31  ;;  %v1945_v31 = vld [vmem:[#allocation5 + $0x124] ss:$16 sps:$4 sm:$0xff]  }
  0x4f   :  { %488 = vmatprep.subr.bf16.mxu0 %v1823_v32  ;;  %v1918_v32 = vld [vmem:[#allocation5 + $0x8c] ss:$16 sps:$4 sm:$0xff]  }
  0x50   :  { %528 = vmatpush1.bf16.msra.mxu1 %v1870_v53  ;;  %v1954_v53 = vld [vmem:[#allocation5 + $0x14c] ss:$16 sps:$4 sm:$0xff]  }
  0x51   :  { %529 = vmatprep.subr.bf16.mxu1 %v1871_v54  ;;  %v1952_v54 = vld [vmem:[#allocation5 + $0x148] ss:$16 sps:$4 sm:$0xff]  }
  0x52   :  { %489 = vmatpush1.bf16.msra.mxu0 %v1825_v35  ;;  %v1951_v35 = vld [vmem:[#allocation5 + $0x144] ss:$16 sps:$4 sm:$0xff]  }
  0x53   :  { %490 = vmatprep.subr.bf16.mxu0 %v1826_v36  ;;  %v1924_v36 = vld [vmem:[#allocation5 + $0xac] ss:$16 sps:$4 sm:$0xff]  }
  0x54   :  { %530 = vmatpush1.bf16.msra.mxu1 %v1873_v57  ;;  %v1966_v57 = vld [vmem:[#allocation5 + $0x18c] ss:$16 sps:$4 sm:$0xff]  }
  0x55   :  { %531 = vmatprep.subr.bf16.mxu1 %v1874_v59  ;;  %v1972_v59 = vld [vmem:[#allocation5 + $0x1ac] ss:$16 sps:$4 sm:$0xff]  }
  0x56   :  { %491 = vmatpush1.bf16.msra.mxu0 %v1828_v39  ;;  %v1957_v39 = vld [vmem:[#allocation5 + $0x164] ss:$16 sps:$4 sm:$0xff]  }
  0x57   :  { %492 = vmatprep.subr.bf16.mxu0 %v1829_v40  ;;  %v1930_v40 = vld [vmem:[#allocation5 + $0xcc] ss:$16 sps:$4 sm:$0xff]  }
  0x58   :  { %532 = vmatpush1.bf16.msra.mxu1 %v1876_v62  ;;  %v1978_v62 = vld [vmem:[#allocation5 + $0x1cc] ss:$16 sps:$4 sm:$0xff]  }
  0x59   :  { %533 = vmatprep.subr.bf16.mxu1 %v1877_v0  ;;  %v1976_v0 = vld [vmem:[#allocation5 + $0x1c8] ss:$16 sps:$4 sm:$0xff]  }
  0x5a   :  { %493 = vmatpush1.bf16.msra.mxu0 %v1831_v43  ;;  %v1963_v43 = vld [vmem:[#allocation5 + $0x184] ss:$16 sps:$4 sm:$0xff]  }
  0x5b   :  { %494 = vmatprep.subr.bf16.mxu0 %v1832_v44  ;;  %v1936_v44 = vld [vmem:[#allocation5 + $0xec] ss:$16 sps:$4 sm:$0xff]  }
  0x5c   :  { %534 = vmatpush1.bf16.msra.mxu1 %v1879_v2  ;;  %v1984_v2 = vld [vmem:[#allocation5 + $0x1ec] ss:$16 sps:$4 sm:$0xff]  }
  0x5d   :  { %535 = vmatprep.subr.bf16.mxu1 %v1880_v4  ;;  %v1982_v4 = vld [vmem:[#allocation5 + $0x1e8] ss:$16 sps:$4 sm:$0xff]  }
  0x5e   :  { %495 = vmatpush1.bf16.msra.mxu0 %v1834_v47  ;;  %v1969_v47 = vld [vmem:[#allocation5 + $0x1a4] ss:$16 sps:$4 sm:$0xff]  }
  0x5f   :  { %496 = vmatprep.subr.bf16.mxu0 %v1835_v48  ;;  %v1942_v48 = vld [vmem:[#allocation5 + $0x10c] ss:$16 sps:$4 sm:$0xff]  }
  0x60   :  { %536 = vmatpush1.bf16.msra.mxu1 %v1882_v6  ;;  %v1990_v6 = vld [vmem:[#allocation5 + $0x20c] ss:$16 sps:$4 sm:$0xff]  }
  0x61   :  { %537 = vmatprep.subr.bf16.mxu1 %v1883_v8 }
  0x62   :  { %497 = vmatpush1.bf16.msra.mxu0 %v1837_v51  ;;  %v1948_v51 = vld [vmem:[#allocation5 + $0x12c] ss:$16 sps:$4 sm:$0xff]  }
  0x63   :  { %498 = vmatprep.subr.bf16.mxu0 %v1838_v52  ;;  %v1946_v52 = vld [vmem:[#allocation5 + $0x128] ss:$16 sps:$4 sm:$0xff]  }
  0x64   :  { %538 = vmatpush1.bf16.msra.mxu1 %v1885_v10  ;;  %v2224_v10 = vld [vmem:[%s2277_s2] sm:$0xf] }
  0x65   :  { %539 = vmatprep.subr.bf16.mxu1 %v1886_v12 }
  0x66   :  { %499 = vmatpush1.bf16.msra.mxu0 %v1842_v55  ;;  %v1960_v55 = vld [vmem:[#allocation5 + $0x16c] ss:$16 sps:$4 sm:$0xff]  }
  0x67   :  { %1348 = vmatprep.subr.bf16.mxu0 %v1891_v58  ;;  %v1964_v58 = vld [vmem:[#allocation5 + $0x188] ss:$16 sps:$4 sm:$0xff]  }
  0x68   :  { %540 = vmatpush1.bf16.msra.mxu1 %v1888_v14 }
  0x69   :  { %501 = vmatmul.mubr.bf16.vlgmr.msra.gmra.mrb[0].mxu0 %v60_v60  ;;  %1430 = vmatprep.subr.bf16.mxu1 %v1894_v15 }
  0x6a   :  { %1349 = vmatpush1.bf16.msra.mxu0 %v1889_v61  ;;  %v1975_v61 = vld [vmem:[#allocation5 + $0x1c4] ss:$16 sps:$4 sm:$0xff]  }
  0x6b   :  { %1350 = vmatprep.subr.bf16.mxu0 %v1897_v63  ;;  %542 = vmatmul.mubr.bf16.vlgmr.msra.gmra.mrb[0].mxu1 %v60_v60  ;;  %v1970_v60 = vld [vmem:[#allocation5 + $0x1a8] ss:$16 sps:$4 sm:$0xff]   ;;  %v1973_v63 = vld [vmem:[#allocation5 + $0x1c0] ss:$16 sps:$4 sm:$0xff]  }
  0x6c   :  { %1431 = vmatpush1.bf16.msra.mxu1 %v1892_v18 }
  0x6d   :  { %1432 = vmatprep.subr.bf16.mxu1 %v1900_v20 }
  0x6e   :  { %1351 = vmatpush1.bf16.msra.mxu0 %v1895_v1  ;;  %v1981_v1 = vld [vmem:[#allocation5 + $0x1e4] ss:$16 sps:$4 sm:$0xff]  }
  0x6f   :  { %1352 = vmatprep.subr.bf16.mxu0 %v1903_v3  ;;  %v1979_v3 = vld [vmem:[#allocation5 + $0x1e0] ss:$16 sps:$4 sm:$0xff]  }
  0x70   :  { %1433 = vmatpush1.bf16.msra.mxu1 %v1898_v22 }
  0x71   :  { %1434 = vmatprep.subr.bf16.mxu1 %v1906_v24  ;;  %v1988_v24 = vld [vmem:[#allocation5 + $0x208] ss:$16 sps:$4 sm:$0xff]  }
  0x72   :  { %1353 = vmatpush1.bf16.msra.mxu0 %v1901_v5  ;;  %v1987_v5 = vld [vmem:[#allocation5 + $0x204] ss:$16 sps:$4 sm:$0xff]  }
  0x73   :  { %1354 = vmatprep.subr.bf16.mxu0 %v1909_v7  ;;  %v128_v7 = vlaneseq }
  0x74   :  { %1435 = vmatpush1.bf16.msra.mxu1 %v1904_v26  ;;  %v1993_v26 = vld [vmem:[#allocation5 + $0x224] ss:$16 sps:$4 sm:$0xff]  }
  0x75   :  { %1436 = vmatprep.subr.bf16.mxu1 %v1912_v28  ;;  %v2216_v8 = vshrl.u32 %v128_v7, 7  ;;  %v1991_v28 = vld [vmem:[#allocation5 + $0x220] ss:$16 sps:$4 sm:$0xff]   ;;  %v2047_v7 = vld [vmem:[#allocation5 + $0x344] ss:$16 sps:$4 sm:$0xff]  }
  0x76   :  { %1355 = vmatpush1.bf16.msra.mxu0 %v1907_v9 }
  0x77   :  { %1356 = vmatprep.subr.bf16.mxu0 %v1915_v11  ;;  %v2219_v9 = vsub.s32 0, %v2216_v8  ;;  %v2227_v11 = vsub.s32 1, %v2216_v8 }
  0x78   :  { %1437 = vmatpush1.bf16.msra.mxu1 %v1910_v30  ;;  %v1999_v30 = vld [vmem:[#allocation5 + $0x244] ss:$16 sps:$4 sm:$0xff]  }
  0x79   :  { %1438 = vmatprep.subr.bf16.mxu1 %v1918_v32  ;;  %v131_v12 = vrot.slane %v2224_v10, %v2219_v9  ;;  %v1997_v32 = vld [vmem:[#allocation5 + $0x240] ss:$16 sps:$4 sm:$0xff]  }
  0x7a   :  { %1357 = vmatpush1.bf16.msra.mxu0 %v1913_v13  ;;  %v135_v13 = vrot.slane %v2224_v10, %v2227_v11 }
  0x7b   :  { %1358 = vmatprep.subr.bf16.mxu0 %v1921_v16 }
  0x7c   :  { %1439 = vmatpush1.bf16.msra.mxu1 %v1916_v34  ;;  %v2005_v34 = vld [vmem:[#allocation5 + $0x264] ss:$16 sps:$4 sm:$0xff]  }
  0x7d   :  { %1440 = vmatprep.subr.bf16.mxu1 %v1924_v36  ;;  %v2234_v36 = vsub.s32 3, %v2216_v8 }
  0x7e   :  { %1359 = vmatpush1.bf16.msra.mxu0 %v1919_v17 }
  0x7f   :  { %1360 = vmatprep.subr.bf16.mxu0 %v1927_v19 }
  0x80   :  { %1441 = vmatpush1.bf16.msra.mxu1 %v1922_v38  ;;  %v2006_v38 = vld [vmem:[#allocation5 + $0x268] ss:$16 sps:$4 sm:$0xff]  }
  0x81   :  { %1442 = vmatprep.subr.bf16.mxu1 %v1930_v40  ;;  %v2014_v40 = vld [vmem:[#allocation5 + $0x28c] ss:$16 sps:$4 sm:$0xff]  }
  0x82   :  { %1361 = vmatpush1.bf16.msra.mxu0 %v1925_v21 }
  0x83   :  { %1362 = vmatprep.subr.bf16.mxu0 %v1933_v23  ;;  %v1985_v23 = vld [vmem:[#allocation5 + $0x200] ss:$16 sps:$4 sm:$0xff]  }
  0x84   :  { %1443 = vmatpush1.bf16.msra.mxu1 %v1928_v42 }
  0x85   :  { %1444 = vmatprep.subr.bf16.mxu1 %v1936_v44  ;;  %v2012_v44 = vld [vmem:[#allocation5 + $0x288] ss:$16 sps:$4 sm:$0xff]  }
  0x86   :  { %1363 = vmatpush1.bf16.msra.mxu0 %v1931_v25 }
  0x87   :  { %1364 = vmatprep.subr.bf16.mxu0 %v1939_v27  ;;  %v1996_v27 = vld [vmem:[#allocation5 + $0x22c] ss:$16 sps:$4 sm:$0xff]  }
  0x88   :  { %1445 = vmatpush1.bf16.msra.mxu1 %v1934_v46  ;;  %v2017_v46 = vld [vmem:[#allocation5 + $0x2a4] ss:$16 sps:$4 sm:$0xff]  }
  0x89   :  { %1446 = vmatprep.subr.bf16.mxu1 %v1942_v48 }
  0x8a   :  { %1365 = vmatpush1.bf16.msra.mxu0 %v1937_v29  ;;  %v1994_v29 = vld [vmem:[#allocation5 + $0x228] ss:$16 sps:$4 sm:$0xff]  }
  0x8b   :  { %1366 = vmatprep.subr.bf16.mxu0 %v1945_v31  ;;  %v2002_v31 = vld [vmem:[#allocation5 + $0x24c] ss:$16 sps:$4 sm:$0xff]  }
  0x8c   :  { %1447 = vmatpush1.bf16.msra.mxu1 %v1940_v50 }
  0x8d   :  { %1448 = vmatprep.subr.bf16.mxu1 %v1948_v51 }
  0x8e   :  { %1367 = vmatpush1.bf16.msra.mxu0 %v1943_v33  ;;  %v2000_v33 = vld [vmem:[#allocation5 + $0x248] ss:$16 sps:$4 sm:$0xff]  }
  0x8f   :  { %1368 = vmatprep.subr.bf16.mxu0 %v1951_v35  ;;  %v2008_v35 = vld [vmem:[#allocation5 + $0x26c] ss:$16 sps:$4 sm:$0xff]  }
  0x90   :  { %1449 = vmatpush1.bf16.msra.mxu1 %v1946_v52  ;;  %v2015_v52 = vld [vmem:[#allocation5 + $0x2a0] ss:$16 sps:$4 sm:$0xff]  }
  0x91   :  { %1450 = vmatprep.subr.bf16.mxu1 %v1954_v53  ;;  %v2018_v53 = vld [vmem:[#allocation5 + $0x2a8] ss:$16 sps:$4 sm:$0xff]  }
  0x92   :  { %1369 = vmatpush1.bf16.msra.mxu0 %v1949_v37  ;;  %v2003_v37 = vld [vmem:[#allocation5 + $0x260] ss:$16 sps:$4 sm:$0xff]  }
  0x93   :  { %1370 = vmatprep.subr.bf16.mxu0 %v1957_v39  ;;  %v2011_v39 = vld [vmem:[#allocation5 + $0x284] ss:$16 sps:$4 sm:$0xff]  }
  0x94   :  { %1451 = vmatpush1.bf16.msra.mxu1 %v1952_v54  ;;  %v2023_v54 = vld [vmem:[#allocation5 + $0x2c4] ss:$16 sps:$4 sm:$0xff]  }
  0x95   :  { %1452 = vmatprep.subr.bf16.mxu1 %v1960_v55  ;;  %v2026_v55 = vld [vmem:[#allocation5 + $0x2cc] ss:$16 sps:$4 sm:$0xff]  }
  0x96   :  { %1371 = vmatpush1.bf16.msra.mxu0 %v1955_v41  ;;  %v143_v41 = vrot.slane %v2224_v10, %v2234_v36 }
  0x97   :  { %1372 = vmatprep.subr.bf16.mxu0 %v1963_v43  ;;  %v2009_v43 = vld [vmem:[#allocation5 + $0x280] ss:$16 sps:$4 sm:$0xff]  }
  0x98   :  { %1453 = vmatpush1.bf16.msra.mxu1 %v1958_v56 }
  0x99   :  { %1454 = vmatprep.subr.bf16.mxu1 %v1966_v57  ;;  %v2021_v57 = vld [vmem:[#allocation5 + $0x2c0] ss:$16 sps:$4 sm:$0xff]  }
  0x9a   :  { %1373 = vmatpush1.bf16.msra.mxu0 %v1961_v45 }
  0x9b   :  { %1374 = vmatprep.subr.bf16.mxu0 %v1969_v47  ;;  %v2020_v47 = vld [vmem:[#allocation5 + $0x2ac] ss:$16 sps:$4 sm:$0xff]  }
  0x9c   :  { %1455 = vmatpush1.bf16.msra.mxu1 %v1964_v58  ;;  %v2024_v58 = vld [vmem:[#allocation5 + $0x2c8] ss:$16 sps:$4 sm:$0xff]  }
  0x9d   :  { %1456 = vmatprep.subr.bf16.mxu1 %v1972_v59  ;;  %v2029_v59 = vld [vmem:[#allocation5 + $0x2e4] ss:$16 sps:$4 sm:$0xff]  }
  0x9e   :  { %1375 = vmatpush1.bf16.msra.mxu0 %v1967_v49 }
  0x9f   :  { %1376 = vmatprep.subr.bf16.mxu0 %v1975_v61  ;;  %v2027_v61 = vld [vmem:[#allocation5 + $0x2e0] ss:$16 sps:$4 sm:$0xff]  }
  0xa0   :  { %1457 = vmatpush1.bf16.msra.mxu1 %v1970_v60  ;;  %v2032_v60 = vld [vmem:[#allocation5 + $0x2ec] ss:$16 sps:$4 sm:$0xff]  }
  0xa1   :  { %1458 = vmatprep.subr.bf16.mxu1 %v1978_v62  ;;  %v2030_v62 = vld [vmem:[#allocation5 + $0x2e8] ss:$16 sps:$4 sm:$0xff]  }
  0xa2   :  { %1377 = vmatpush1.bf16.msra.mxu0 %v1973_v63  ;;  %v2035_v63 = vld [vmem:[#allocation5 + $0x304] ss:$16 sps:$4 sm:$0xff]  }
  0xa3   :  { %1378 = vmatprep.subr.bf16.mxu0 %v1981_v1  ;;  %v2033_v1 = vld [vmem:[#allocation5 + $0x300] ss:$16 sps:$4 sm:$0xff]  }
  0xa4   :  { %1459 = vmatpush1.bf16.msra.mxu1 %v1976_v0  ;;  %v2038_v0 = vld [vmem:[#allocation5 + $0x30c] ss:$16 sps:$4 sm:$0xff]  }
  0xa5   :  { %1460 = vmatprep.subr.bf16.mxu1 %v1984_v2  ;;  %v2036_v2 = vld [vmem:[#allocation5 + $0x308] ss:$16 sps:$4 sm:$0xff]  }
  0xa6   :  { %1379 = vmatpush1.bf16.msra.mxu0 %v1979_v3  ;;  %v2041_v3 = vld [vmem:[#allocation5 + $0x324] ss:$16 sps:$4 sm:$0xff]  }
  0xa7   :  { %1389 = vmatprep.subr.bf16.mxu0 %v1987_v5  ;;  %v2039_v5 = vld [vmem:[#allocation5 + $0x320] ss:$16 sps:$4 sm:$0xff]  }
  0xa8   :  { %1461 = vmatpush1.bf16.msra.mxu1 %v1982_v4  ;;  %v2044_v4 = vld [vmem:[#allocation5 + $0x32c] ss:$16 sps:$4 sm:$0xff]  }
  0xa9   :  { %1471 = vmatprep.subr.bf16.mxu1 %v1990_v6  ;;  %v2042_v6 = vld [vmem:[#allocation5 + $0x328] ss:$16 sps:$4 sm:$0xff]  }
 0x13c   :  { %v502_v14 = vpop.f32.mrb[0].mxu0 }
 0x13d   :  { %v503_v15 = vadd.f32 %v502_v14, %v131_v12  ;;  %v504_v16 = vpop.f32.mrb[1].mxu0  ;;  %v2050_v12 = vld [vmem:[#allocation5 + $0x34c] ss:$16 sps:$4 sm:$0xff]   ;;  %v2048_v14 = vld [vmem:[#allocation5 + $0x348] ss:$16 sps:$4 sm:$0xff]  }
 0x13e   :  { %v505_v17 = vadd.f32 %v504_v16, %v135_v13  ;;  %v506_v18 = vpop.f32.mrb[2].mxu0  ;;  %v2238_v42 = vpop.f32.mrb[0].mxu1  ;;  %v2045_v13 = vld [vmem:[#allocation5 + $0x340] ss:$16 sps:$4 sm:$0xff]   ;;  %v2056_v16 = vld [vmem:[#allocation5 + $0x36c] ss:$16 sps:$4 sm:$0xff]  }
 0x13f   :  { %v550_v19 = vmax.f32 %v503_v15, 0.0  ;;  %v507_v20 = vpop.f32.mrb[3].mxu0  ;;  %v545_v45 = vpop.f32.mrb[1].mxu1  ;;  %v2053_v15 = vld [vmem:[#allocation5 + $0x364] ss:$16 sps:$4 sm:$0xff]  }
 0x140   :  { %v551_v21 = vmax.f32 %v505_v17, 0.0  ;;  %v546_v48 = vadd.f32 %v545_v45, %v143_v41  ;;  %v547_v49 = vpop.f32.mrb[2].mxu1  ;;  %v2051_v17 = vld [vmem:[#allocation5 + $0x360] ss:$16 sps:$4 sm:$0xff]   ;;  %v2054_v18 = vld [vmem:[#allocation5 + $0x368] ss:$16 sps:$4 sm:$0xff]  }
 0x141   :  { %v554_v25 = vpack.c.bf16 %v550_v19, %v550_v19  ;;  %v548_v50 = vpop.f32.mrb[3].mxu1  ;;  %v2059_v19 = vld [vmem:[#allocation5 + $0x384] ss:$16 sps:$4 sm:$0xff]   ;;  %v2062_v20 = vld [vmem:[#allocation5 + $0x38c] ss:$16 sps:$4 sm:$0xff]  }
 0x142   :  { %v555_v22 = vpack.c.bf16 %v551_v21, %v551_v21  ;;  %v553_v51 = vmax.f32 %v546_v48, 0.0  ;;  %v2057_v21 = vld [vmem:[#allocation5 + $0x380] ss:$16 sps:$4 sm:$0xff]  }
 0x144   :  { %1380 = vmatprep.mubr.bf16.mxu0 %v555_v22  ;;  %1462 = vmatprep.mubr.bf16.mxu1 %v555_v22  ;;  %v557_v56 = vpack.c.bf16 %v553_v51, %v553_v51  ;;  %v2060_v22 = vld [vmem:[#allocation5 + $0x388] ss:$16 sps:$4 sm:$0xff]  }
 0x145   :  { %1381 = vmatmul.mubr.bf16.vlgmr.msra.gmra.mrb[4].mxu0 %v554_v25  ;;  %1463 = vmatmul.mubr.bf16.vlgmr.msra.gmra.mrb[4].mxu1 %v554_v25  ;;  %v2068_v25 = vld [vmem:[#allocation5 + $0x3ac] ss:$16 sps:$4 sm:$0xff]  }
 0x146   :  { %1390 = vmatpush1.bf16.msra.mxu0 %v1985_v23  ;;  %1472 = vmatpush1.bf16.msra.mxu1 %v1988_v24  ;;  %v2241_v23 = vsub.s32 2, %v2216_v8  ;;  %v2065_v24 = vld [vmem:[#allocation5 + $0x3a4] ss:$16 sps:$4 sm:$0xff]  }
 0x147   :  { %1391 = vmatprep.subr.bf16.mxu0 %v1993_v26  ;;  %1473 = vmatprep.subr.bf16.mxu1 %v1996_v27  ;;  %v2063_v26 = vld [vmem:[#allocation5 + $0x3a0] ss:$16 sps:$4 sm:$0xff]   ;;  %v2066_v27 = vld [vmem:[#allocation5 + $0x3a8] ss:$16 sps:$4 sm:$0xff]  }
 0x148   :  { %1421 = vmatprep.mubr.bf16.mxu0 %v557_v56  ;;  %1503 = vmatprep.mubr.bf16.mxu1 %v557_v56 }
 0x14a   :  { %1392 = vmatpush1.bf16.msra.mxu0 %v1991_v28  ;;  %1474 = vmatpush1.bf16.msra.mxu1 %v1994_v29  ;;  %v139_v28 = vrot.slane %v2224_v10, %v2241_v23  ;;  %v2071_v29 = vld [vmem:[#allocation5 + $0x3c4] ss:$16 sps:$4 sm:$0xff]  }
 0x14b   :  { %1393 = vmatprep.subr.bf16.mxu0 %v1999_v30  ;;  %1475 = vmatprep.subr.bf16.mxu1 %v2002_v31  ;;  %v2074_v30 = vld [vmem:[#allocation5 + $0x3cc] ss:$16 sps:$4 sm:$0xff]   ;;  %v2069_v31 = vld [vmem:[#allocation5 + $0x3c0] ss:$16 sps:$4 sm:$0xff]  }
 0x14c   :  { %v544_v8 = vadd.f32 %v2238_v42, %v139_v28  ;;  %v1520_v42 = vld [vmem:[%s2280_s5] sm:$0xf] }
 0x14d   :  { %v1525_v48 = vrot.slane %v1520_v42, %v2219_v9 }
 0x14e   :  { %1394 = vmatpush1.bf16.msra.mxu0 %v1997_v32  ;;  %1476 = vmatpush1.bf16.msra.mxu1 %v2000_v33  ;;  %v2072_v32 = vld [vmem:[#allocation5 + $0x3c8] ss:$16 sps:$4 sm:$0xff]   ;;  %v2077_v33 = vld [vmem:[#allocation5 + $0x3e4] ss:$16 sps:$4 sm:$0xff]  }
 0x14f   :  { %1395 = vmatprep.subr.bf16.mxu0 %v2005_v34  ;;  %1477 = vmatprep.subr.bf16.mxu1 %v2008_v35  ;;  %v2080_v34 = vld [vmem:[#allocation5 + $0x3ec] ss:$16 sps:$4 sm:$0xff]   ;;  %v2075_v35 = vld [vmem:[#allocation5 + $0x3e0] ss:$16 sps:$4 sm:$0xff]  }
 0x152   :  { %1396 = vmatpush1.bf16.msra.mxu0 %v2003_v37  ;;  %1478 = vmatpush1.bf16.msra.mxu1 %v2006_v38  ;;  %v2078_v37 = vld [vmem:[#allocation5 + $0x3e8] ss:$16 sps:$4 sm:$0xff]   ;;  %v552_v38 = vmax.f32 %v544_v8, 0.0 }
 0x153   :  { %1397 = vmatprep.subr.bf16.mxu0 %v2011_v39  ;;  %1479 = vmatprep.subr.bf16.mxu1 %v2014_v40  ;;  %v686_v39 = vld [vmem:[%s2279_s4] sm:$0xf] }
 0x154   :  { %v556_v10 = vpack.c.bf16 %v552_v38, %v552_v38  ;;  %v691_v40 = vrot.slane %v686_v39, %v2219_v9  ;;  %v699_v41 = vrot.slane %v686_v39, %v2241_v23 }
 0x156   :  { %1398 = vmatpush1.bf16.msra.mxu0 %v2009_v43  ;;  %1480 = vmatpush1.bf16.msra.mxu1 %v2012_v44  ;;  %v695_v43 = vrot.slane %v686_v39, %v2227_v11  ;;  %v703_v44 = vrot.slane %v686_v39, %v2234_v36 }
 0x157   :  { %1399 = vmatprep.subr.bf16.mxu0 %v2017_v46  ;;  %1481 = vmatprep.subr.bf16.mxu1 %v2020_v47 }
 0x15a   :  { %1400 = vmatpush1.bf16.msra.mxu0 %v2015_v52  ;;  %1482 = vmatpush1.bf16.msra.mxu1 %v2018_v53  ;;  %v1529_v53 = vrot.slane %v1520_v42, %v2227_v11 }
 0x15b   :  { %1401 = vmatprep.subr.bf16.mxu0 %v2023_v54  ;;  %1483 = vmatprep.subr.bf16.mxu1 %v2026_v55 }
 0x15e   :  { %1402 = vmatpush1.bf16.msra.mxu0 %v2021_v57  ;;  %1484 = vmatpush1.bf16.msra.mxu1 %v2024_v58 }
 0x15f   :  { %1403 = vmatprep.subr.bf16.mxu0 %v2029_v59  ;;  %1485 = vmatprep.subr.bf16.mxu1 %v2032_v60 }
 0x162   :  { %1404 = vmatpush1.bf16.msra.mxu0 %v2027_v61  ;;  %1486 = vmatpush1.bf16.msra.mxu1 %v2030_v62  ;;  %v1533_v61 = vrot.slane %v1520_v42, %v2241_v23 }
 0x163   :  { %1405 = vmatprep.subr.bf16.mxu0 %v2035_v63  ;;  %1487 = vmatprep.subr.bf16.mxu1 %v2038_v0  ;;  %v1537_v0 = vrot.slane %v1520_v42, %v2234_v36 }
 0x166   :  { %1406 = vmatpush1.bf16.msra.mxu0 %v2033_v1  ;;  %1488 = vmatpush1.bf16.msra.mxu1 %v2036_v2 }
 0x167   :  { %1407 = vmatprep.subr.bf16.mxu0 %v2041_v3  ;;  %1489 = vmatprep.subr.bf16.mxu1 %v2044_v4 }
 0x16a   :  { %1408 = vmatpush1.bf16.msra.mxu0 %v2039_v5  ;;  %1490 = vmatpush1.bf16.msra.mxu1 %v2042_v6  ;;  %v2137_v6 = vmov 0  }
 0x16b   :  { %1409 = vmatprep.subr.bf16.mxu0 %v2047_v7  ;;  %1491 = vmatprep.subr.bf16.mxu1 %v2050_v12  ;;  %v1773_v7 = vld [vmem:[#allocation2] ss:$0 sm:$0xff] }
 0x16c   :  { %1792 = vset.pattern.permute.xlu0 %v2137_v6 }
 0x16e   :  { %1410 = vmatpush1.bf16.msra.mxu0 %v2045_v13  ;;  %1492 = vmatpush1.bf16.msra.mxu1 %v2048_v14 }
 0x16f   :  { %1411 = vmatprep.subr.bf16.mxu0 %v2053_v15  ;;  %1493 = vmatprep.subr.bf16.mxu1 %v2056_v16 }
 0x172   :  { %1412 = vmatpush1.bf16.msra.mxu0 %v2051_v17  ;;  %1494 = vmatpush1.bf16.msra.mxu1 %v2054_v18 }
 0x173   :  { %1413 = vmatprep.subr.bf16.mxu0 %v2059_v19  ;;  %1495 = vmatprep.subr.bf16.mxu1 %v2062_v20 }
 0x176   :  { %1414 = vmatpush1.bf16.msra.mxu0 %v2057_v21  ;;  %1496 = vmatpush1.bf16.msra.mxu1 %v2060_v22 }
 0x177   :  { %1415 = vmatprep.subr.bf16.mxu0 %v2065_v24  ;;  %1497 = vmatprep.subr.bf16.mxu1 %v2068_v25 }
 0x17a   :  { %1416 = vmatpush1.bf16.msra.mxu0 %v2063_v26  ;;  %1498 = vmatpush1.bf16.msra.mxu1 %v2066_v27 }
 0x17b   :  { %1417 = vmatprep.subr.bf16.mxu0 %v2071_v29  ;;  %1499 = vmatprep.subr.bf16.mxu1 %v2074_v30 }
 0x17e   :  { %1418 = vmatpush1.bf16.msra.mxu0 %v2069_v31  ;;  %1500 = vmatpush1.bf16.msra.mxu1 %v2072_v32 }
 0x17f   :  { %1419 = vmatprep.subr.bf16.mxu0 %v2077_v33  ;;  %1501 = vmatprep.subr.bf16.mxu1 %v2080_v34 }
 0x182   :  { %1420 = vmatpush1.bf16.msra.mxu0 %v2075_v35  ;;  %1502 = vmatpush1.bf16.msra.mxu1 %v2078_v37 }
 0x185   :  { %1422 = vmatmul.mubr.bf16.vlgmr.msra.gmra.mrb[4].mxu0 %v556_v10  ;;  %1504 = vmatmul.mubr.bf16.vlgmr.msra.gmra.mrb[4].mxu1 %v556_v10 }
 0x258   :  { %v1423_v45 = vpop.f32.mrb[4].mxu0  ;;  %v1505_v46 = vpop.f32.mrb[4].mxu1 }
 0x259   :  { %v1775_v47 = vadd.f32 %v1423_v45, %v691_v40  ;;  %v1777_v49 = vadd.f32 %v1505_v46, %v699_v41  ;;  %v1425_v50 = vpop.f32.mrb[5].mxu0  ;;  %v1507_v51 = vpop.f32.mrb[5].mxu1 }
 0x25a   :  { %v1776_v52 = vadd.f32 %v1425_v50, %v695_v43  ;;  %v1778_v54 = vadd.f32 %v1507_v51, %v703_v44  ;;  %v1427_v55 = vpop.f32.mrb[6].mxu0  ;;  %v1509_v56 = vpop.f32.mrb[6].mxu1 }
 0x25b   :  { %v1512_v57 = vmax.f32 %v1775_v47, 0.0  ;;  %v1514_v58 = vmax.f32 %v1777_v49, 0.0  ;;  %v1428_v59 = vpop.f32.mrb[7].mxu0  ;;  %v1510_v60 = vpop.f32.mrb[7].mxu1 }
 0x25c   :  { %v1513_v62 = vmax.f32 %v1776_v52, 0.0  ;;  %v1515_v63 = vmax.f32 %v1778_v54, 0.0 }
 0x25d   :  { %1516 = vst [vmem:[%s2283_s8] sm:$0xff] %v1512_v57  ;;  %v1542_v9 = vmul.f32 %v1525_v48, %v1512_v57  ;;  %1518 = vst [vmem:[%s2283_s8 + $0x10] sm:$0xff] %v1514_v58  ;;  %v1544_v1 = vmul.f32 %v1533_v61, %v1514_v58 }
 0x25e   :  { %1517 = vst [vmem:[%s2283_s8 + $0x8] sm:$0xff] %v1513_v62  ;;  %v1543_v11 = vmul.f32 %v1529_v53, %v1513_v62  ;;  %1519 = vst [vmem:[%s2283_s8 + $0x18] sm:$0xff] %v1515_v63  ;;  %v1545_v3 = vmul.f32 %v1537_v0, %v1515_v63 }
 0x260   :  { %v1546_v2 = vadd.f32 %v1543_v11, %v1542_v9 }
 0x262   :  { %v1547_v4 = vadd.f32 %v1546_v2, %v1544_v1 }
 0x264   :  { %v1548_v5 = vadd.f32 %v1547_v4, %v1545_v3 }
 0x266   :  { %1549 = vadd.xlane.f32.xlu0 %v1548_v5 }
 0x2f3   :  { %v1550_v12 = vpop.xlane.xlu0 %1549 }
 0x2f4   :  { %v1558_v13 = vadd.f32 %v1773_v7, %v1550_v12 }
 0x2f6   :  { %v1774_v14 = vmul.f32 -1.442695, %v1558_v13 }
 0x2f8   :  { %2081 = vpow2.f32 %v1774_v14 }
 0x302   :  { %v2082_v15 = vpop.eup %2081 }
 0x303   :  { %v1562_v16 = vadd.f32 1.0, %v2082_v15 }
 0x305   :  { %2083 = vrcp.f32 %v1562_v16 }
 0x30f   :  { %v2084_v17 = vpop.eup %2083 }
 0x310   :  { %1567 = vperm.xlu0 %1792, %v2084_v17  }
 0x38f   :  { %v1568_v18 = vpop.permute.xlu0 %1567 }
 0x390   :  { %1570 = vst [vmem:[%s2282_s7] sm:$0xff] %v1568_v18 }
 0x391   :  { %1579 = vsyncpa [#allocation4], 1 }
 0x392   :  { %1580 = vsyncpa [#allocation6], 1 }

</bundles_post_ra>
